<compile_context>
chip_gen: v6e
topology: v6e:2x2x1
jax: 0.10.0
libtpu: 0.0.40
codegen_flags: <defaults>
</compile_context>

<pallas_src>
import functools

import jax
import jax.numpy as jnp
from jax.experimental import pallas as pl
from jax.experimental.pallas import tpu as pltpu


# --------------------------------------------------------------------------- #
# Kernel: growth_horizon tile = last-growth-step (per batch) * damping factors
# --------------------------------------------------------------------------- #
def _scale_store_kernel(g_ref, damp_ref, gh_ref):
    """Pure broadcast-multiply and store.

    g_ref:    (b_tile, 1, D)       last growth step for this batch tile (VMEM)
    damp_ref: (t_tile, D)          lane-dense cumulative damping factors (f32)
    gh_ref:   (b_tile, t_tile, D)  growth-horizon output tile
    """
    g = g_ref[...].astype(jnp.float32)          # (b_tile, 1, D)
    d = damp_ref[...]                            # (t_tile, D) f32
    # (b_tile, 1, D) * (1, t_tile, D) -> (b_tile, t_tile, D); dropout is
    # identity in eval mode.
    gh_ref[...] = (g * d[None, :, :]).astype(gh_ref.dtype)


# --------------------------------------------------------------------------- #
# Host-side glue
# --------------------------------------------------------------------------- #
def _damping_factors(damping_param, pred_len):
    """Tiny O(pred_len*nhead) computation — done once, outside the kernel."""
    df = jax.nn.sigmoid(damping_param.astype(jnp.float32))            # (1, nhead)
    powers = (jnp.arange(pred_len, dtype=jnp.float32) + 1.0)[:, None]  # (pred_len,1)
    return jnp.cumsum(df ** powers, axis=0)                            # (pred_len, nhead)


def _pick_tiles(B, pred_len, D, itemsize, target_bytes=2 << 20):
    """Pick (b_tile, t_tile) so the output block stays ~<=2 MiB.

    Keeps t_tile a multiple of 8 (or the full pred_len) so blocks stay
    sublane-aligned; ~2 MiB blocks amortize the per-step grid overhead while
    fitting comfortably under the default scoped-VMEM limits of v5e (16 MiB),
    v6e (32 MiB) and v7x (32 MiB) with double-buffered inputs and outputs.
    """
    b_tile, t_tile = B, pred_len
    while b_tile * t_tile * D * itemsize > target_bytes and (t_tile > 8 or b_tile > 1):
        if t_tile > 8:
            t_tile = max(8, ((t_tile // 2) + 7) // 8 * 8)
        else:
            b_tile = max(1, b_tile // 2)
    return b_tile, t_tile


def decoder_layer_forward(growth, season, damping_param, *, pred_len, nhead,
                          output_attention=False):
    """JAX wrapper mirroring DecoderLayer.forward(growth, season) in eval mode."""
    B, _, D = growth.shape
    assert D % nhead == 0
    head_dim = D // nhead

    # Damping factors (tiny), then per-head -> per-lane expansion once.
    damp = _damping_factors(damping_param, pred_len)                   # (pred_len, nhead)
    damp_full = jnp.repeat(damp, head_dim, axis=1)                     # (pred_len, D) f32

    # Last growth time step, exactly growth[:, -1:] in torch.  Kept as wrapper
    # glue so the kernel's input block last-two dims are full-extent (1, D).
    g_last = growth[:, -1:, :]                                         # (B, 1, D)

    b_tile, t_tile = _pick_tiles(B, pred_len, D, jnp.dtype(growth.dtype).itemsize)
    grid = (pl.cdiv(B, b_tile), pl.cdiv(pred_len, t_tile))

    gh = pl.pallas_call(
        _scale_store_kernel,
        out_shape=jax.ShapeDtypeStruct((B, pred_len, D), growth.dtype),
        grid_spec=pltpu.PrefetchScalarGridSpec(
            num_scalar_prefetch=0,
            grid=grid,
            in_specs=[
                # last growth step: depends only on the batch grid index
                pl.BlockSpec((b_tile, 1, D), lambda b, t: (b, 0, 0)),
                # damping factors: depends only on the time grid index
                pl.BlockSpec((t_tile, D), lambda b, t: (t, 0)),
            ],
            out_specs=pl.BlockSpec((b_tile, t_tile, D), lambda b, t: (b, t, 0)),
        ),
        compiler_params=pltpu.CompilerParams(
            dimension_semantics=("parallel", "parallel")),
    )(g_last, damp_full)

    # Seasonal horizon is a pure slice.
    seasonal_horizon = season[:, -pred_len:, :]

    # TODO(synk): train-mode dropout (dropout1 / DampingLayer.dropout) not
    # implemented — eval-mode identity only.
    if output_attention:
        return gh, seasonal_horizon, damp
    return gh, seasonal_horizon, None


# --------------------------------------------------------------------------- #
# Pure-JAX reference (mirrors the PyTorch forward, eval mode)
# --------------------------------------------------------------------------- #
def _reference(growth, season, damping_param, *, pred_len, nhead):
    B, _, D = growth.shape
    df = jax.nn.sigmoid(damping_param)                                 # (1, nhead)
    powers = (jnp.arange(pred_len, dtype=jnp.float32) + 1.0)[:, None]
    damp = jnp.cumsum(df ** powers, axis=0)                            # (pred_len, nhead)
    x = jnp.repeat(growth[:, -1:, :], pred_len, axis=1)                # (B, pred_len, D)
    x = x.reshape(B, pred_len, nhead, D // nhead)
    gh = (x * damp[None, :, :, None]).reshape(B, pred_len, D)
    sh = season[:, -pred_len:, :]
    return gh, sh, damp


if __name__ == "__main__":
    # Small shapes consistent with the module.
    B = 2
    d_model = 32
    nhead = 4
    pred_len = 8
    T_growth = 9     # growth sequence length (only the last step is used)
    T_season = 16    # season sequence length (>= pred_len)

    key = jax.random.PRNGKey(0)
    k1, k2, k3 = jax.random.split(key, 3)
    growth = jax.random.normal(k1, (B, T_growth, d_model), dtype=jnp.float32)
    season = jax.random.normal(k2, (B, T_season, d_model), dtype=jnp.float32)
    # nn.Parameter(torch.randn(1, nhead)) -> deterministic synthetic init.
    damping_param = jax.random.normal(k3, (1, nhead), dtype=jnp.float32)

    gh, sh, attn = decoder_layer_forward(
        growth, season, damping_param, pred_len=pred_len, nhead=nhead,
        output_attention=False)
    jax.block_until_ready((gh, sh))

    gh_ref, sh_ref, damp_ref = _reference(
        growth, season, damping_param, pred_len=pred_len, nhead=nhead)

    assert gh.shape == (B, pred_len, d_model)
    assert sh.shape == (B, pred_len, d_model)
    assert attn is None
    assert jnp.allclose(gh, gh_ref, atol=1e-5, rtol=1e-5)
    assert jnp.allclose(sh, sh_ref)

    # Also exercise the output_attention=True path (damping factors returned).
    gh2, sh2, damp2 = decoder_layer_forward(
        growth, season, damping_param, pred_len=pred_len, nhead=nhead,
        output_attention=True)
    jax.block_until_ready((gh2, sh2, damp2))
    assert jnp.allclose(damp2, damp_ref, atol=1e-5, rtol=1e-5)
    assert jnp.allclose(gh2, gh_ref, atol=1e-5, rtol=1e-5)

    print("KERNEL_OK")
</pallas_src>

<mosaic_0001>
module attributes {stable_mosaic.version = 11 : i64} {
  func.func @_scale_store_kernel(%arg0: i32, %arg1: i32, %arg2: memref<2x1x32xf32, #tpu.memory_space<vmem>>, %arg3: memref<8x32xf32, #tpu.memory_space<vmem>>, %arg4: memref<2x8x32xf32, #tpu.memory_space<vmem>>) attributes {dimension_semantics = [#tpu.dimension_semantics<parallel>, #tpu.dimension_semantics<parallel>], iteration_bounds = array<i64: 1, 1>, scalar_prefetch = 0 : i64, scratch_operands = 0 : i64, tpu.core_type = #tpu.core_type<tc>, window_params = [{transform_indices = @transform_0, window_bounds = array<i64: 2, 1, 32>}, {transform_indices = @transform_1, window_bounds = array<i64: 8, 32>}, {transform_indices = @transform_2, window_bounds = array<i64: 2, 8, 32>}]} {
    %c0 = arith.constant 0 : index
    %c0_0 = arith.constant 0 : index
    %c0_1 = arith.constant 0 : index
    %0 = vector.load %arg2[%c0, %c0_0, %c0_1] : memref<2x1x32xf32, #tpu.memory_space<vmem>>, vector<2x1x32xf32>
    %c0_2 = arith.constant 0 : index
    %c0_3 = arith.constant 0 : index
    %1 = vector.load %arg3[%c0_2, %c0_3] : memref<8x32xf32, #tpu.memory_space<vmem>>, vector<8x32xf32>
    %2 = vector.shape_cast %1 : vector<8x32xf32> to vector<1x8x32xf32>
    %3 = vector.broadcast %0 : vector<2x1x32xf32> to vector<2x8x32xf32>
    %4 = vector.broadcast %2 : vector<1x8x32xf32> to vector<2x8x32xf32>
    %5 = arith.mulf %3, %4 : vector<2x8x32xf32>
    %c0_4 = arith.constant 0 : index
    %c0_5 = arith.constant 0 : index
    %c0_6 = arith.constant 0 : index
    %6 = vector.load %arg4[%c0_4, %c0_5, %c0_6] : memref<2x8x32xf32, #tpu.memory_space<vmem>>, vector<2x8x32xf32>
    tpu.vector_store %arg4[%c0_4, %c0_5, %c0_6], %5 {strides = array<i32>} : memref<2x8x32xf32, #tpu.memory_space<vmem>>, vector<2x8x32xf32>,
    return
  }
  func.func @transform_0(%arg0: i32, %arg1: i32) -> (i32, i32, i32) {
    %c0_i32 = arith.constant 0 : i32
    %c0_i32_0 = arith.constant 0 : i32
    %c0_i32_1 = arith.constant 0 : i32
    return %arg0, %c0_i32, %c0_i32_0 : i32, i32, i32
  }
  func.func @transform_1(%arg0: i32, %arg1: i32) -> (i32, i32) {
    %c0_i32 = arith.constant 0 : i32
    %c0_i32_0 = arith.constant 0 : i32
    return %arg1, %c0_i32 : i32, i32
  }
  func.func @transform_2(%arg0: i32, %arg1: i32) -> (i32, i32, i32) {
    %c0_i32 = arith.constant 0 : i32
    %c0_i32_0 = arith.constant 0 : i32
    return %arg0, %arg1, %c0_i32 : i32, i32, i32
  }
}

</mosaic_0001>

<bundles_post_ra>
// kernel: tpu_custom_call.1
= control target key start
LH: loop header
LB: loop body
LE: loop exit
PB: predicated region body
PF: predicated region fallthrough
CT: control target
= control target key end

     0   :  { %7 = vsyncpa [#allocation3], 0  ;;  %s182_s0 = inlined_call_operand.hbm [shape: f32[2,1,32], index: 0, kind: input, shape index: {}]   ;;  %s183_s1 = inlined_call_operand.hbm [shape: f32[8,32], index: 1, kind: input, shape index: {}]   ;;  %s184_s2 = inlined_call_operand.hbm [shape: f32[2,8,32], index: 2, kind: output, shape index: {}]  }
   0x1   :  { %8 = vsyncpa [#allocation6], 0 }
   0x2   :  { %9 = vsyncpa [#allocation4], 0  ;;  %s151_s9 = smov [#allocation2]  }
   0x3   :  { %s15_s10 = sshll.u32 %s151_s9, 4  ;;  %s16_s10 = int_to_ptr.vmem [resolvable:$true] %s15_s10 }
   0x4   :  { %s93_s11 = scalar_lea.vmem %s16_s10, 32  ;;  %p98_p1 = scmp.lt.s32.totalorder %s16_s10, %s16_s10 }
   0x5   :  { %p94_p0 = scmp.ne.s32.totalorder %s16_s10, %s93_s11  ;;  %p99_p2 = scmp.lt.s32.totalorder %s93_s11, %s93_s11 }
   0x7   :  { %p100_p3 = por %p99_p2, %p98_p1 }
   0x9   :  { %p101_p4 = pnand %p100_p3, %p94_p0 }
   0xb   :  { %104 = shalt.err (!%p101_p4)
}
   0xc   :  { %s152_s12 = smov 16   ;;  %s153_s13 = smov 1  }
   0xd   :  { %21 = dma.hbm_to_vmem [thread:$0]  %s182_s0, 32, %s16_s10, [#allocation3], %s152_s12, %s152_s12, %s153_s13  }
   0xe   :  { %s154_s16 = smov [#allocation5]  }
   0xf   :  { %s28_s17 = sshll.u32 %s154_s16, 4  ;;  %s29_s17 = int_to_ptr.vmem [resolvable:$true] %s28_s17 }
  0x10   :  { %s113_s18 = scalar_lea.vmem %s29_s17, 128  ;;  %p118_p6 = scmp.lt.s32.totalorder %s29_s17, %s29_s17 }
  0x11   :  { %p114_p5 = scmp.ne.s32.totalorder %s29_s17, %s113_s18  ;;  %p119_p7 = scmp.lt.s32.totalorder %s113_s18, %s113_s18 }
  0x13   :  { %p120_p8 = por %p119_p7, %p118_p6 }
  0x15   :  { %p121_p9 = pnand %p120_p8, %p114_p5 }
  0x17   :  { %124 = shalt.err (!%p121_p9)
}
  0x18   :  { %31 = dma.hbm_to_vmem [thread:$0]  %s183_s1, 128, %s29_s17, [#allocation6]  }
  0x19   :  { %145 = dma.done.wait [#allocation3], 32  }
  0x1a   :  { %146 = vsyncadd [#allocation3], 4294967264 }
  0x1b   :  { %147 = dma.done.wait [#allocation6], 128  }
  0x1c   :  { %148 = vsyncadd [#allocation6], 4294967168  ;;  %s155_s21 = smov [#allocation7]   ;;  %vm55_vm0 = vcmask 261120   ;;  %v76_v0 = vld [vmem:[#allocation2] ss:$0 sm:$0xff] }
  0x1d   :  { %s63_s0 = sshll.u32 %s155_s21, 4  ;;  %v40_v1 = vld [vmem:[#allocation5] sm:$0xff]  ;;  %v77_v2 = vld [vmem:[#allocation2 + $0x1] ss:$0 sm:$0xff]  ;;  %s64_s0 = int_to_ptr.vmem [resolvable:$true] %s63_s0 }
  0x1e   :  { %v53_v3 = vmul.f32 %v76_v0, %v40_v1  ;;  %v54_v4 = vmul.f32 %v77_v2, %v40_v1  ;;  %s125_s22 = scalar_lea.vmem %s64_s0, 256  ;;  %p130_p11 = scmp.lt.s32.totalorder %s64_s0, %s64_s0 }
  0x1f   :  { %p126_p10 = scmp.ne.s32.totalorder %s64_s0, %s125_s22  ;;  %p131_p12 = scmp.lt.s32.totalorder %s125_s22, %s125_s22 }
  0x20   :  { %56 = vst.msk [vmem:[#allocation7] sm:$0xff] %vm55_vm0, %v53_v3  ;;  %57 = vst.msk [vmem:[#allocation7 + $0x8] sm:$0xff] %vm55_vm0, %v54_v4 }
  0x21   :  { %p132_p13 = por %p131_p12, %p130_p11 }
  0x23   :  { %p133_p0 = pnand %p132_p13, %p126_p10 }
  0x25   :  { %136 = shalt.err (!%p133_p0)
}
  0x26   :  { %s156_s1 = smov 128   ;;  %s157_s23 = smov 8  }
  0x27   :  { %69 = dma.vmem_to_hbm [thread:$0]  %s64_s0, 256, %s184_s2, [#allocation4], %s156_s1, %s156_s1, %s157_s23  }
  0x28   :  { %149 = dma.done.wait [#allocation4], 256  }
  0x29   :  { %150 = vsyncadd [#allocation4], 4294967040 }
  0x2a   :  { %73 = vsyncpa [#allocation3], 1 }
  0x2b   :  { %74 = vsyncpa [#allocation6], 1 }
  0x2c   :  { %75 = vsyncpa [#allocation4], 1 }

</bundles_post_ra>
